<compile_context>
chip_gen: v6e
topology: v6e:2x2x1
jax: 0.10.0
libtpu: 0.0.40
codegen_flags: <defaults>
</compile_context>

<pallas_src>
import functools

import jax
import jax.numpy as jnp
from jax import lax
from jax.experimental import pallas as pl
from jax.experimental.pallas import tpu as pltpu


def _attention_kernel(x_ref, w_qkv_ref, w_out_ref, b_out_ref, o_ref, *,
                      heads, dim_head, mxu_dtype):
    # x_ref:     (1, N, D)        current batch row-block
    # w_qkv_ref: (D, 3*H*Dh)      fused qkv projection (q-part pre-scaled), resident
    # w_out_ref: (H*Dh, D)        output projection, resident
    # b_out_ref: (1, D)           output bias, resident
    # o_ref:     (1, N, D)        output block
    inner = heads * dim_head
    x = x_ref[0]                                                     # (N, D) native dtype

    # Fused QKV projection: single lane-dense MXU dot, f32 accumulation.
    qkv = jnp.dot(x, w_qkv_ref[...],
                  preferred_element_type=jnp.float32)                # (N, 3*inner) f32

    outs = []
    for h in range(heads):                                           # static, unrolled (H small)
        q_h = qkv[:, h * dim_head:(h + 1) * dim_head]                # (N, Dh), scale pre-folded
        k_h = qkv[:, inner + h * dim_head:inner + (h + 1) * dim_head]
        v_h = qkv[:, 2 * inner + h * dim_head:2 * inner + (h + 1) * dim_head]

        # scores = q_h @ k_h^T with the transpose folded into the MXU feed.
        scores = lax.dot_general(
            q_h.astype(mxu_dtype), k_h.astype(mxu_dtype),
            dimension_numbers=(((1,), (1,)), ((), ())),
            preferred_element_type=jnp.float32)                      # (N, N) f32

        # Numerically stable softmax, kept entirely in f32.
        scores = scores - jnp.max(scores, axis=-1, keepdims=True)
        e = jnp.exp(scores)
        attn = e / jnp.sum(e, axis=-1, keepdims=True)

        outs.append(jnp.dot(attn.astype(mxu_dtype), v_h.astype(mxu_dtype),
                            preferred_element_type=jnp.float32))     # (N, Dh)

    out = jnp.concatenate(outs, axis=-1)                             # (N, inner) 'b h n d -> n (h d)'

    # Single output projection + bias, written straight to the output block.
    y = jnp.dot(out.astype(mxu_dtype), w_out_ref[...],
                preferred_element_type=jnp.float32)                  # (N, D)
    o_ref[0] = (y + b_out_ref[...]).astype(o_ref.dtype)
    # TODO(synk): Dropout(p) for p>0 in training mode is not implemented (p=0.0 -> identity).


def attention_forward(x, w_qkv, w_out, b_out, *, heads, dim_head):
    """x: (B, N, D); w_qkv: (D, 3*H*Dh); w_out: (H*Dh, D); b_out: (1, D)."""
    B, N, D = x.shape
    H, Dh = heads, dim_head
    inner = H * Dh
    scale = dim_head ** -0.5

    # One-time weight transform outside the kernel: fold the attention scale
    # into the q-projection columns (PyTorch to_qkv output is [q | k | v]).
    w_qkv_scaled = jnp.concatenate([w_qkv[:, :inner] * scale, w_qkv[:, inner:]], axis=1)

    # bf16 inputs feed the MXU in bf16 (f32 accumulation); f32 inputs stay f32.
    mxu_dtype = jnp.bfloat16 if x.dtype == jnp.bfloat16 else jnp.float32

    kernel = functools.partial(_attention_kernel, heads=H, dim_head=Dh,
                               mxu_dtype=mxu_dtype)

    itemsize = x.dtype.itemsize
    flops = int(2 * B * N * D * 3 * inner        # qkv projection
                + 4 * B * H * N * N * Dh         # scores + attn @ v
                + 2 * B * N * inner * D)         # output projection
    bytes_accessed = int(x.size * itemsize
                         + w_qkv.size * itemsize       # weights fetched once (resident)
                         + w_out.size * itemsize
                         + b_out.size * itemsize
                         + B * N * D * itemsize)       # output

    return pl.pallas_call(
        kernel,
        out_shape=jax.ShapeDtypeStruct((B, N, D), x.dtype),
        grid_spec=pltpu.PrefetchScalarGridSpec(
            num_scalar_prefetch=0,
            grid=(B,),
            in_specs=[
                pl.BlockSpec((1, N, D), lambda b: (b, 0, 0)),        # x (streamed per batch)
                pl.BlockSpec((D, 3 * inner), lambda b: (0, 0)),      # w_qkv (resident)
                pl.BlockSpec((inner, D), lambda b: (0, 0)),          # w_out (resident)
                pl.BlockSpec((1, D), lambda b: (0, 0)),              # b_out (resident)
            ],
            out_specs=pl.BlockSpec((1, N, D), lambda b: (b, 0, 0)),
        ),
        compiler_params=pltpu.CompilerParams(
            dimension_semantics=("parallel",),                       # feed both v7x TCs (B >= 2)
        ),
        cost_estimate=pl.CostEstimate(
            flops=flops,
            transcendentals=int(B * H * N * N),
            bytes_accessed=bytes_accessed,
        ),
    )(x, w_qkv_scaled, w_out, b_out)


def attention_reference(x, w_qkv, w_out, b_out, *, heads, dim_head):
    """Plain-JAX reference matching the PyTorch forward exactly."""
    B, N, D = x.shape
    inner = heads * dim_head
    scale = dim_head ** -0.5
    qkv = jnp.einsum('bnd,de->bne', x, w_qkv)
    q, k, v = jnp.split(qkv, 3, axis=-1)

    def to_heads(t):  # 'b n (h d) -> b h n d'
        return t.reshape(B, N, heads, dim_head).transpose(0, 2, 1, 3)

    q, k, v = map(to_heads, (q, k, v))
    dots = jnp.einsum('bhnd,bhmd->bhnm', q, k) * scale
    attn = jax.nn.softmax(dots, axis=-1)
    out = jnp.einsum('bhnm,bhmd->bhnd', attn, v)
    out = out.transpose(0, 2, 1, 3).reshape(B, N, inner)  # 'b h n d -> b n (h d)'
    return jnp.einsum('bni,id->bnd', out, w_out) + b_out[0]


if __name__ == "__main__":
    # Small shapes consistent with the module: dim=32, heads=4, dim_head=16.
    B, N, D = 2, 16, 32
    heads, dim_head = 4, 16
    inner = heads * dim_head

    key = jax.random.PRNGKey(0)
    kx, kq, ko, kb = jax.random.split(key, 4)

    x = jax.random.normal(kx, (B, N, D), dtype=jnp.float32)
    # Deterministic synthetic parameters (PyTorch nn.Linear weights, shape (out, in),
    # passed pre-transposed as (in, out)).
    w_qkv = jax.random.normal(kq, (D, 3 * inner), dtype=jnp.float32) * 0.02
    w_out = jax.random.normal(ko, (inner, D), dtype=jnp.float32) * 0.02
    b_out = jax.random.normal(kb, (1, D), dtype=jnp.float32) * 0.02

    y = attention_forward(x, w_qkv, w_out, b_out, heads=heads, dim_head=dim_head)
    y = jax.block_until_ready(y)

    y_ref = attention_reference(x, w_qkv, w_out, b_out, heads=heads, dim_head=dim_head)
    assert y.shape == (B, N, D)
    assert jnp.allclose(y, y_ref, atol=1e-3, rtol=1e-3), "mismatch vs reference"

    print("KERNEL_OK")
</pallas_src>

<mosaic_0001>
module attributes {stable_mosaic.version = 11 : i64} {
  func.func @_attention_kernel(%arg0: i32, %arg1: memref<1x16x32xf32, #tpu.memory_space<vmem>>, %arg2: memref<32x192xf32, #tpu.memory_space<vmem>>, %arg3: memref<64x32xf32, #tpu.memory_space<vmem>>, %arg4: memref<1x32xf32, #tpu.memory_space<vmem>>, %arg5: memref<1x16x32xf32, #tpu.memory_space<vmem>>) attributes {dimension_semantics = [#tpu.dimension_semantics<parallel>], iteration_bounds = array<i64: 2>, scalar_prefetch = 0 : i64, scratch_operands = 0 : i64, tpu.core_type = #tpu.core_type<tc>, window_params = [{transform_indices = @transform_0, window_bounds = array<i64: 1, 16, 32>}, {pipeline_mode = #tpu.pipeline_mode<synchronous>, transform_indices = @transform_1, window_bounds = array<i64: 32, 192>}, {pipeline_mode = #tpu.pipeline_mode<synchronous>, transform_indices = @transform_2, window_bounds = array<i64: 64, 32>}, {pipeline_mode = #tpu.pipeline_mode<synchronous>, transform_indices = @transform_3, window_bounds = array<i64: 1, 32>}, {transform_indices = @transform_4, window_bounds = array<i64: 1, 16, 32>}]} {
    %c0 = arith.constant 0 : index
    %c0_0 = arith.constant 0 : index
    %c0_1 = arith.constant 0 : index
    %0 = vector.load %arg1[%c0, %c0_0, %c0_1] : memref<1x16x32xf32, #tpu.memory_space<vmem>>, vector<1x16x32xf32>
    %1 = vector.shape_cast %0 : vector<1x16x32xf32> to vector<16x32xf32>
    %c0_2 = arith.constant 0 : index
    %c0_3 = arith.constant 0 : index
    %2 = vector.load %arg2[%c0_2, %c0_3] : memref<32x192xf32, #tpu.memory_space<vmem>>, vector<32x192xf32>
    %cst = arith.constant dense<0.000000e+00> : vector<16x192xf32>
    %3 = tpu.matmul %1, %2, %cst {dimension_numbers = #tpu.dot_dimension_numbers<[1], [0], [0], [1], [0, 0, 1, 1], [], []>} : vector<16x32xf32>, vector<32x192xf32>, vector<16x192xf32> -> vector<16x192xf32>
    %4 = vector.extract_strided_slice %3 {offsets = [0, 0], sizes = [16, 16], strides = [1, 1]} : vector<16x192xf32> to vector<16x16xf32>
    %5 = vector.extract_strided_slice %3 {offsets = [0, 64], sizes = [16, 16], strides = [1, 1]} : vector<16x192xf32> to vector<16x16xf32>
    %6 = vector.extract_strided_slice %3 {offsets = [0, 128], sizes = [16, 16], strides = [1, 1]} : vector<16x192xf32> to vector<16x16xf32>
    %cst_4 = arith.constant dense<0.000000e+00> : vector<16x16xf32>
    %7 = tpu.matmul %4, %5, %cst_4 {dimension_numbers = #tpu.dot_dimension_numbers<[1], [1], [0], [0], [0, 0, 1, 0], [], []>} : vector<16x16xf32>, vector<16x16xf32>, vector<16x16xf32> -> vector<16x16xf32>
    %cst_5 = arith.constant dense<0xFF800000> : vector<16xf32>
    %8 = vector.multi_reduction <maximumf>, %7, %cst_5 [1] : vector<16x16xf32> to vector<16xf32>
    %9 = vector.shape_cast %8 : vector<16xf32> to vector<16x1xf32>
    %10 = vector.broadcast %9 : vector<16x1xf32> to vector<16x16xf32>
    %11 = arith.subf %7, %10 : vector<16x16xf32>
    %12 = math.exp %11 : vector<16x16xf32>
    %cst_6 = arith.constant dense<0.000000e+00> : vector<16xf32>
    %13 = vector.multi_reduction <add>, %12, %cst_6 [1] : vector<16x16xf32> to vector<16xf32>
    %14 = vector.shape_cast %13 : vector<16xf32> to vector<16x1xf32>
    %15 = vector.broadcast %14 : vector<16x1xf32> to vector<16x16xf32>
    %16 = arith.divf %12, %15 : vector<16x16xf32>
    %cst_7 = arith.constant dense<0.000000e+00> : vector<16x16xf32>
    %17 = tpu.matmul %16, %6, %cst_7 {dimension_numbers = #tpu.dot_dimension_numbers<[1], [0], [0], [1], [0, 0, 1, 1], [], []>} : vector<16x16xf32>, vector<16x16xf32>, vector<16x16xf32> -> vector<16x16xf32>
    %18 = vector.extract_strided_slice %3 {offsets = [0, 16], sizes = [16, 16], strides = [1, 1]} : vector<16x192xf32> to vector<16x16xf32>
    %19 = vector.extract_strided_slice %3 {offsets = [0, 80], sizes = [16, 16], strides = [1, 1]} : vector<16x192xf32> to vector<16x16xf32>
    %20 = vector.extract_strided_slice %3 {offsets = [0, 144], sizes = [16, 16], strides = [1, 1]} : vector<16x192xf32> to vector<16x16xf32>
    %cst_8 = arith.constant dense<0.000000e+00> : vector<16x16xf32>
    %21 = tpu.matmul %18, %19, %cst_8 {dimension_numbers = #tpu.dot_dimension_numbers<[1], [1], [0], [0], [0, 0, 1, 0], [], []>} : vector<16x16xf32>, vector<16x16xf32>, vector<16x16xf32> -> vector<16x16xf32>
    %cst_9 = arith.constant dense<0xFF800000> : vector<16xf32>
    %22 = vector.multi_reduction <maximumf>, %21, %cst_9 [1] : vector<16x16xf32> to vector<16xf32>
    %23 = vector.shape_cast %22 : vector<16xf32> to vector<16x1xf32>
    %24 = vector.broadcast %23 : vector<16x1xf32> to vector<16x16xf32>
    %25 = arith.subf %21, %24 : vector<16x16xf32>
    %26 = math.exp %25 : vector<16x16xf32>
    %cst_10 = arith.constant dense<0.000000e+00> : vector<16xf32>
    %27 = vector.multi_reduction <add>, %26, %cst_10 [1] : vector<16x16xf32> to vector<16xf32>
    %28 = vector.shape_cast %27 : vector<16xf32> to vector<16x1xf32>
    %29 = vector.broadcast %28 : vector<16x1xf32> to vector<16x16xf32>
    %30 = arith.divf %26, %29 : vector<16x16xf32>
    %cst_11 = arith.constant dense<0.000000e+00> : vector<16x16xf32>
    %31 = tpu.matmul %30, %20, %cst_11 {dimension_numbers = #tpu.dot_dimension_numbers<[1], [0], [0], [1], [0, 0, 1, 1], [], []>} : vector<16x16xf32>, vector<16x16xf32>, vector<16x16xf32> -> vector<16x16xf32>
    %32 = vector.extract_strided_slice %3 {offsets = [0, 32], sizes = [16, 16], strides = [1, 1]} : vector<16x192xf32> to vector<16x16xf32>
    %33 = vector.extract_strided_slice %3 {offsets = [0, 96], sizes = [16, 16], strides = [1, 1]} : vector<16x192xf32> to vector<16x16xf32>
    %34 = vector.extract_strided_slice %3 {offsets = [0, 160], sizes = [16, 16], strides = [1, 1]} : vector<16x192xf32> to vector<16x16xf32>
    %cst_12 = arith.constant dense<0.000000e+00> : vector<16x16xf32>
    %35 = tpu.matmul %32, %33, %cst_12 {dimension_numbers = #tpu.dot_dimension_numbers<[1], [1], [0], [0], [0, 0, 1, 0], [], []>} : vector<16x16xf32>, vector<16x16xf32>, vector<16x16xf32> -> vector<16x16xf32>
    %cst_13 = arith.constant dense<0xFF800000> : vector<16xf32>
    %36 = vector.multi_reduction <maximumf>, %35, %cst_13 [1] : vector<16x16xf32> to vector<16xf32>
    %37 = vector.shape_cast %36 : vector<16xf32> to vector<16x1xf32>
    %38 = vector.broadcast %37 : vector<16x1xf32> to vector<16x16xf32>
    %39 = arith.subf %35, %38 : vector<16x16xf32>
    %40 = math.exp %39 : vector<16x16xf32>
    %cst_14 = arith.constant dense<0.000000e+00> : vector<16xf32>
    %41 = vector.multi_reduction <add>, %40, %cst_14 [1] : vector<16x16xf32> to vector<16xf32>
    %42 = vector.shape_cast %41 : vector<16xf32> to vector<16x1xf32>
    %43 = vector.broadcast %42 : vector<16x1xf32> to vector<16x16xf32>
    %44 = arith.divf %40, %43 : vector<16x16xf32>
    %cst_15 = arith.constant dense<0.000000e+00> : vector<16x16xf32>
    %45 = tpu.matmul %44, %34, %cst_15 {dimension_numbers = #tpu.dot_dimension_numbers<[1], [0], [0], [1], [0, 0, 1, 1], [], []>} : vector<16x16xf32>, vector<16x16xf32>, vector<16x16xf32> -> vector<16x16xf32>
    %46 = vector.extract_strided_slice %3 {offsets = [0, 48], sizes = [16, 16], strides = [1, 1]} : vector<16x192xf32> to vector<16x16xf32>
    %47 = vector.extract_strided_slice %3 {offsets = [0, 112], sizes = [16, 16], strides = [1, 1]} : vector<16x192xf32> to vector<16x16xf32>
    %48 = vector.extract_strided_slice %3 {offsets = [0, 176], sizes = [16, 16], strides = [1, 1]} : vector<16x192xf32> to vector<16x16xf32>
    %cst_16 = arith.constant dense<0.000000e+00> : vector<16x16xf32>
    %49 = tpu.matmul %46, %47, %cst_16 {dimension_numbers = #tpu.dot_dimension_numbers<[1], [1], [0], [0], [0, 0, 1, 0], [], []>} : vector<16x16xf32>, vector<16x16xf32>, vector<16x16xf32> -> vector<16x16xf32>
    %cst_17 = arith.constant dense<0xFF800000> : vector<16xf32>
    %50 = vector.multi_reduction <maximumf>, %49, %cst_17 [1] : vector<16x16xf32> to vector<16xf32>
    %51 = vector.shape_cast %50 : vector<16xf32> to vector<16x1xf32>
    %52 = vector.broadcast %51 : vector<16x1xf32> to vector<16x16xf32>
    %53 = arith.subf %49, %52 : vector<16x16xf32>
    %54 = math.exp %53 : vector<16x16xf32>
    %cst_18 = arith.constant dense<0.000000e+00> : vector<16xf32>
    %55 = vector.multi_reduction <add>, %54, %cst_18 [1] : vector<16x16xf32> to vector<16xf32>
    %56 = vector.shape_cast %55 : vector<16xf32> to vector<16x1xf32>
    %57 = vector.broadcast %56 : vector<16x1xf32> to vector<16x16xf32>
    %58 = arith.divf %54, %57 : vector<16x16xf32>
    %cst_19 = arith.constant dense<0.000000e+00> : vector<16x16xf32>
    %59 = tpu.matmul %58, %48, %cst_19 {dimension_numbers = #tpu.dot_dimension_numbers<[1], [0], [0], [1], [0, 0, 1, 1], [], []>} : vector<16x16xf32>, vector<16x16xf32>, vector<16x16xf32> -> vector<16x16xf32>
    %60 = tpu.concatenate %17, %31, %45, %59 in 1 : vector<16x16xf32>, vector<16x16xf32>, vector<16x16xf32>, vector<16x16xf32> -> vector<16x64xf32>
    %c0_20 = arith.constant 0 : index
    %c0_21 = arith.constant 0 : index
    %61 = vector.load %arg3[%c0_20, %c0_21] : memref<64x32xf32, #tpu.memory_space<vmem>>, vector<64x32xf32>
    %cst_22 = arith.constant dense<0.000000e+00> : vector<16x32xf32>
    %62 = tpu.matmul %60, %61, %cst_22 {dimension_numbers = #tpu.dot_dimension_numbers<[1], [0], [0], [1], [0, 0, 1, 1], [], []>} : vector<16x64xf32>, vector<64x32xf32>, vector<16x32xf32> -> vector<16x32xf32>
    %c0_23 = arith.constant 0 : index
    %c0_24 = arith.constant 0 : index
    %63 = vector.load %arg4[%c0_23, %c0_24] : memref<1x32xf32, #tpu.memory_space<vmem>>, vector<1x32xf32>
    %64 = vector.broadcast %63 : vector<1x32xf32> to vector<16x32xf32>
    %65 = arith.addf %62, %64 : vector<16x32xf32>
    %c0_25 = arith.constant 0 : index
    %c0_26 = arith.constant 0 : index
    %c0_27 = arith.constant 0 : index
    %66 = vector.load %arg5[%c0_25, %c0_26, %c0_27] : memref<1x16x32xf32, #tpu.memory_space<vmem>>, vector<1x16x32xf32>
    %67 = vector.shape_cast %66 : vector<1x16x32xf32> to vector<16x32xf32>
    %68 = vector.shape_cast %65 : vector<16x32xf32> to vector<1x16x32xf32>
    tpu.vector_store %arg5[%c0_25, %c0_26, %c0_27], %68 {strides = array<i32>} : memref<1x16x32xf32, #tpu.memory_space<vmem>>, vector<1x16x32xf32>,
    return
  }
  func.func @transform_0(%arg0: i32) -> (i32, i32, i32) {
    %c0_i32 = arith.constant 0 : i32
    %c0_i32_0 = arith.constant 0 : i32
    %c0_i32_1 = arith.constant 0 : i32
    return %arg0, %c0_i32, %c0_i32_0 : i32, i32, i32
  }
  func.func @transform_1(%arg0: i32) -> (i32, i32) {
    %c0_i32 = arith.constant 0 : i32
    %c0_i32_0 = arith.constant 0 : i32
    %c0_i32_1 = arith.constant 0 : i32
    return %c0_i32, %c0_i32_0 : i32, i32
  }
  func.func @transform_2(%arg0: i32) -> (i32, i32) {
    %c0_i32 = arith.constant 0 : i32
    %c0_i32_0 = arith.constant 0 : i32
    %c0_i32_1 = arith.constant 0 : i32
    return %c0_i32, %c0_i32_0 : i32, i32
  }
  func.func @transform_3(%arg0: i32) -> (i32, i32) {
    %c0_i32 = arith.constant 0 : i32
    %c0_i32_0 = arith.constant 0 : i32
    %c0_i32_1 = arith.constant 0 : i32
    return %c0_i32, %c0_i32_0 : i32, i32
  }
  func.func @transform_4(%arg0: i32) -> (i32, i32, i32) {
    %c0_i32 = arith.constant 0 : i32
    %c0_i32_0 = arith.constant 0 : i32
    %c0_i32_1 = arith.constant 0 : i32
    return %arg0, %c0_i32, %c0_i32_0 : i32, i32, i32
  }
}

</mosaic_0001>

<bundles_post_ra>
// kernel: tpu_custom_call.1
= control target key start
LH: loop header
LB: loop body
LE: loop exit
PB: predicated region body
PF: predicated region fallthrough
CT: control target
= control target key end

     0   :  { %9 = vsyncpa [#allocation3], 0  ;;  %s1907_s0 = inlined_call_operand.vmem [shape: f32[2,16,32], index: 0, kind: input, shape index: {}]   ;;  %s1908_s1 = inlined_call_operand.vmem [shape: f32[32,192], index: 1, kind: input, shape index: {}]   ;;  %s1909_s2 = inlined_call_operand.vmem [shape: f32[64,32], index: 2, kind: input, shape index: {}]   ;;  %s1910_s3 = inlined_call_operand.vmem [shape: f32[1,32], index: 3, kind: input, shape index: {}]   ;;  %s1911_s4 = inlined_call_operand.hbm [shape: f32[2,16,32], index: 4, kind: output, shape index: {}]  }
   0x1   :  { %11 = vsyncpa [#allocation3 + $0x1], 0  ;;  %s1630_s15 = smov 0   ;;  %s1632_s16 = smov 0  }
   0x2   :  { %s1634_s17 = smov 0   ;;  %s1636_s18 = smov 0  }
   0x3 LB: > { %s1651_s19 = sadd.s32 4294967295, %s1592_s18   ;;  %s1291_s20 = sadd.s32 4294967294, %s1592_s18   ;;  %s1592_s18 = sphi %s1636_s18, %s1917_s18   ;;  %s1588_s17 = sphi %s1634_s17, %s1916_s17   ;;  %s1584_s16 = sphi %s1632_s16, %s1915_s16   ;;  %s1580_s15 = sphi %s1630_s15, %s1914_s15  }
   0x4   : > { %s1655_s21 = sadd.s32 1, %s1592_s18   ;;  %s113_s22 = sadd.s32 1, %s1588_s17 }
   0x5   : > { %s110_s23 = ssub.s32 %s1592_s18, %s1655_s21  ;;  %p123_p0 = scmp.ne.s32.totalorder %s1588_s17, %s1584_s16 }
   0x6   : > { %p111_p1 = scmp.eq.s32.totalorder %s110_s23, 0  ;;  %p124_p2 = scmp.eq.s32.totalorder %s1651_s19, 1 }
   0x7   : > { %p129_p3 = scmp.ne.s32.totalorder %s1584_s16, %s1580_s15  ;;  %p130_p4 = scmp.eq.s32.totalorder %s1291_s20, 1 }
   0x8   : > { %s1666_s24 = scalar_select %p111_p1, %s1588_s17, %s113_s22  }
   0x9   : > { %p1668_p5 = por %p124_p2, %p123_p0  ;;  %p1672_p6 = por %p130_p4, %p129_p3 }
   0xa   : > { %p1294_p7 = scmp.ge.s32.totalorder %s1592_s18, 1  ;;  %p165_p8 = scmp.lt.s32.totalorder %s1592_s18, 3 }
   0xc   : > { %p166_p9 = pnand %p1294_p7, %p165_p8 }
   0xd   : > { %p191_p10 = scmp.lt.s32.totalorder (!%p166_p9), %s1651_s19, 1  ;;  %s1595_s5 = smov (!%p166_p9), 64  }
   0xe   : > { %169 = sbr.rel (%p166_p9) target bundleno = 1954 (0x7a2), region = 36  ;;  %s1596_s6 = smov (!%p166_p9), 48  }
   0xf   : > { %s1597_s7 = smov (!%p166_p9), 32   ;;  %s1598_s8 = smov (!%p166_p9), 112  }
  0x10   : > { %s1599_s9 = smov (!%p166_p9), 96   ;;  %s1600_s10 = smov (!%p166_p9), 16  }
  0x11   : > { %s1333_s23 = sshll.u32 (!%p166_p9), %s1651_s19, 8 }
  0x12   : > { %s1863_s29 = scalar_lea.hbm (!%p166_p9), %s1911_s4, %s1333_s23 }
  0x13   : > { %v205_v0 = vld [vmem:[%s1908_s1 + $0x38] sm:$0xff]  ;;  %v204_v1 = vld [vmem:[%s1908_s1 + $0x30] sm:$0xff]  ;;  %v203_v2 = vld [vmem:[%s1908_s1 + $0x28] sm:$0xff]  ;;  %v1594_v4 = vmov 0.0   ;;  %s192_s11 = scalar_select %p191_p10, %s1651_s19, 1  ;;  %vm206_vm0 = vcmask 261120  }
  0x14   : > { %237 = vmatprep.subr.mxu1 %v205_v0  ;;  %v202_v3 = vld [vmem:[%s1908_s1 + $0x20] sm:$0xff]  ;;  %277 = vmatprep.mubr.f32.mxu1 %v1594_v4  ;;  %v201_v5 = vld [vmem:[%s1908_s1 + $0x18] sm:$0xff]  ;;  %v200_v6 = vld [vmem:[%s1908_s1 + $0x10] sm:$0xff]  ;;  %vm296_vm1 = vcmask 130048   ;;  %vm1113_vm2 = vcmask 392192   ;;  %vm1131_vm3 = vcmask 523264  }
  0x15   : > { %238 = vmatpush1.msra.mxu1 %v204_v1  ;;  %v199_v7 = vld [vmem:[%s1908_s1 + $0x8] sm:$0xff]  ;;  %s1332_s22 = sshll.u32 %s192_s11, 4  ;;  %v198_v8 = vld [vmem:[%s1908_s1] sm:$0xff]  ;;  %s1601_s11 = smov 80  }
  0x16   : > { %239 = vmatprep.subr.mxu1 %v203_v2  ;;  %s195_s30 = scalar_lea.vmem %s1907_s0, %s1332_s22 }
  0x17   : > { %240 = vmatpush1.msra.mxu1 %v202_v3  ;;  %v196_v9 = vld [vmem:[%s195_s30] sm:$0xff]  ;;  %v197_v10 = vld [vmem:[%s195_s30 + $0x8] sm:$0xff] }
  0x18   : > { %241 = vmatprep.subr.mxu1 %v201_v5 }
  0x19   : > { %242 = vmatpush1.msra.mxu1 %v200_v6 }
  0x1a   : > { %243 = vmatprep.subr.mxu1 %v199_v7 }
  0x1b   : > { %244 = vmatpush1.msra.mxu1 %v198_v8 }
  0x1c   : > { %1298 = vmatmul.mubr.msk.f32.vlgmr.msra.gmra.mxu1 %vm206_vm0, %v196_v9 }
  0x1d   : > { %283 = vmatprep.mubr.f32.mxu1 %v1594_v4 }
  0x20   : > { %1299 = vmatmul.mubr.msk.f32.gmra.mxu1 %vm206_vm0, %v197_v10 }
  0xdc   : > { %v1709_v11 = vpop.f32.mrf.mxu1 }
  0xdd   : > { %292 = vrot.lane.b32.xlu1 %v1709_v11, %s1595_s5  ;;  %1380 = vmatprep.mubr.msk.f32.mxu1 %vm296_vm1, %v1709_v11 }
  0xde   : > { %v1714_v12 = vpop.f32.mrf.mxu1 }
  0xe0   : > { %v1716_v13 = vpop.f32.mrf.mxu1 }
  0xe1   : > { %487 = vrot.lane.b32.xlu1 %v1709_v11, %s1596_s6  ;;  %294 = vrot.lane.b32.xlu0 %v1716_v13, %s1595_s5  ;;  %s1602_s5 = smov [#allocation2]  }
  0xe2   : > { %v1739_v18 = vpop.f32.mrf.mxu1 }
  0xe5   : > { %691 = vrot.lane.b32.xlu1 %v1716_v13, %s1597_s7  ;;  %489 = vrot.lane.b32.xlu0 %v1716_v13, %s1596_s6 }
  0xe9   : > { %689 = vrot.lane.b32.xlu1 %v1709_v11, %s1597_s7  ;;  %483 = vrot.lane.b32.xlu0 %v1709_v11, %s1598_s8 }
  0xed   : > { %687 = vrot.lane.b32.xlu1 %v1716_v13, %s1599_s9  ;;  %485 = vrot.lane.b32.xlu0 %v1716_v13, %s1598_s8 }
  0xf1   : > { %685 = vrot.lane.b32.xlu0 %v1709_v11, %s1599_s9 }
 0x14f   : > { %v293_v14 = vpop.permute.xlu1 %292 }
 0x153   : > { %v295_v15 = vpop.permute.xlu0 %294  ;;  %v488_v16 = vpop.permute.xlu1 %487 }
 0x154   : > { %1376 = vmatprep.subr.msk.mxu1 %vm296_vm1, %v295_v15 }
 0x155   : > { %1377 = vmatpush3.xpose.msk.msra.mxu1 %vm296_vm1, %v295_v15 }
 0x156   : > { %1378 = vmatprep.subr.msk.mxu1 %vm296_vm1, %v293_v14 }
 0x157   : > { %v490_v17 = vpop.permute.xlu0 %489  ;;  %v692_v19 = vpop.permute.xlu1 %691 }
 0x158   : > { %1390 = vmatprep.subr.msk.mxu0 %vm296_vm1, %v490_v17 }
 0x159   : > { %1379 = vmatpush3.xpose.msk.msra.mxu1 %vm296_vm1, %v293_v14  ;;  %1391 = vmatpush3.xpose.msk.msra.mxu0 %vm296_vm1, %v490_v17 }
 0x15a   : > { %1383 = vmatprep.subr.mxu1 %v1739_v18  ;;  %1392 = vmatprep.subr.msk.mxu0 %vm296_vm1, %v488_v16 }
 0x15b   : > { %v484_v20 = vpop.permute.xlu0 %483  ;;  %v690_v22 = vpop.permute.xlu1 %689 }
 0x15c   : > { %1381 = vmatmul.mubr.msk.f32.vlgmr.msra.gmra.mxu1 %vm296_vm1, %v1716_v13  ;;  %1394 = vmatprep.mubr.msk.f32.mxu0 %vm296_vm1, %v484_v20 }
 0x15d   : > { %1384 = vmatpush3.msra.mxu1 %v1739_v18  ;;  %1393 = vmatpush3.xpose.msk.msra.mxu0 %vm296_vm1, %v488_v16 }
 0x15e   : > { %1385 = vmatprep.subr.mxu1 %v1714_v12  ;;  %1404 = vmatprep.subr.msk.mxu0 %vm296_vm1, %v692_v19 }
 0x15f   : > { %v486_v21 = vpop.permute.xlu0 %485  ;;  %1386 = vmatpush3.msra.mxu1 %v1714_v12  ;;  %v688_v24 = vpop.permute.xlu1 %687 }
 0x160   : > { %1395 = vmatmul.mubr.msk.f32.vlgmr.msra.gmra.mxu0 %vm296_vm1, %v486_v21 }
 0x161   : > { %1405 = vmatpush3.xpose.msk.msra.mxu0 %vm296_vm1, %v692_v19 }
 0x162   : > { %1406 = vmatprep.subr.msk.mxu0 %vm296_vm1, %v690_v22 }
 0x163   : > { %v686_v23 = vpop.permute.xlu0 %685 }
 0x164   : > { %1408 = vmatprep.mubr.msk.f32.mxu0 %vm296_vm1, %v686_v23 }
 0x165   : > { %1407 = vmatpush3.xpose.msk.msra.mxu0 %vm296_vm1, %v690_v22 }
 0x168   : > { %1409 = vmatmul.mubr.msk.f32.vlgmr.msra.gmra.mxu0 %vm296_vm1, %v688_v24 }
 0x21c   : > { %v1382_v25 = vpop.f32.mrf.mxu1 }
 0x21d   : > { %v383_v26 = vsel %vm296_vm1, %v1382_v25, -inf }
 0x21e   : > { %384 = vmax.xlane.f32.xlu1 %v383_v26  ;;  %v371_v27 = vpop.f32.mrf.mxu1 }
 0x21f   : > { %v380_v28 = vsel %vm296_vm1, %v371_v27, -inf }
 0x220   : > { %v1396_v29 = vpop.f32.mrf.mxu0  ;;  %381 = vmax.xlane.f32.xlu0 %v380_v28 }
 0x221   : > { %v577_v32 = vsel %vm296_vm1, %v1396_v29, -inf }
 0x222   : > { %v565_v30 = vpop.f32.mrf.mxu0 }
 0x223   : > { %v574_v31 = vsel %vm296_vm1, %v565_v30, -inf }
 0x224   : > { %575 = vmax.xlane.f32.xlu0 %v574_v31 }
 0x228   : > { %v1410_v33 = vpop.f32.mrf.mxu0  ;;  %578 = vmax.xlane.f32.xlu0 %v577_v32 }
 0x229   : > { %v779_v34 = vsel %vm296_vm1, %v1410_v33, -inf }
 0x22a   : > { %v767_v35 = vpop.f32.mrf.mxu0 }
 0x22b   : > { %v776_v36 = vsel %vm296_vm1, %v767_v35, -inf }
 0x22c   : > { %780 = vmax.xlane.f32.xlu0 %v779_v34 }
 0x22f   : > { %600 = vrot.lane.b32.xlu1 %v1739_v18, %s1598_s8 }
 0x233   : > { %800 = vrot.lane.b32.xlu1 %v1739_v18, %s1599_s9 }
 0x242   : > { %598 = vrot.lane.b32.xlu0 %v1714_v12, %s1598_s8 }
 0x257   : > { %777 = vmax.xlane.f32.xlu1 %v776_v36 }
 0x268   : > { %798 = vrot.lane.b32.xlu1 %v1714_v12, %s1599_s9 }
 0x2a7   : > { %v385_v37 = vpop.xlane.xlu1 %384 }
 0x2a8   : > { %v387_v38 = vsub.f32 %v1382_v25, %v385_v37 }
 0x2a9   : > { %v382_v39 = vpop.xlane.xlu0 %381 }
 0x2aa   : > { %v390_v40 = vmul.f32 1.442695, %v387_v38  ;;  %v386_v41 = vsub.f32 %v371_v27, %v382_v39 }
 0x2ab   : > { %v1773_v42 = vpop.permute.xlu1 %600 }
 0x2ac   : > { %1500 = vpow2.f32 %v390_v40  ;;  %v388_v43 = vmul.f32 1.442695, %v386_v41  ;;  %1397 = vmatprep.subr.mxu1 %v1773_v42 }
 0x2ad   : > { %v576_v44 = vpop.xlane.xlu0 %575 }
 0x2ae   : > { %1502 = vpow2.f32 %v388_v43  ;;  %v580_v45 = vsub.f32 %v565_v30, %v576_v44 }
 0x2af   : > { %v801_v63 = vpop.permute.xlu1 %800 }
 0x2b0   : > { %v582_v46 = vmul.f32 1.442695, %v580_v45 }
 0x2b1   : > { %v579_v47 = vpop.xlane.xlu0 %578 }
 0x2b2   : > { %1504 = vpow2.f32 %v582_v46  ;;  %v581_v48 = vsub.f32 %v1396_v29, %v579_v47 }
 0x2b4   : > { %v584_v49 = vmul.f32 1.442695, %v581_v48 }
 0x2b5   : > { %v781_v50 = vpop.xlane.xlu0 %780 }
 0x2b6   : > { %1506 = vpow2.f32 %v584_v49  ;;  %v783_v51 = vsub.f32 %v1410_v33, %v781_v50 }
 0x2b8   : > { %v786_v52 = vmul.f32 1.442695, %v783_v51 }
 0x2b9   : > { %v1501_v53 = vpop.eup %1500  ;;  %v599_v5 = vpop.permute.xlu0 %598 }
 0x2ba   : > { %1508 = vpow2.f32 %v786_v52  ;;  %v395_v54 = vsel %vm296_vm1, %v1501_v53, 0.0 }
 0x2bb   : > { %v1503_v55 = vpop.eup %1502  ;;  %396 = vadd.xlane.f32.xlu0 %v395_v54 }
 0x2bc   : > { %v392_v56 = vsel %vm296_vm1, %v1503_v55, 0.0 }
 0x2bd   : > { %393 = vadd.xlane.f32.xlu1 %v392_v56 }
 0x2bf   : > { %v1505_v57 = vpop.eup %1504 }
 0x2c0   : > { %v586_v58 = vsel %vm296_vm1, %v1505_v57, 0.0 }
 0x2c1   : > { %587 = vadd.xlane.f32.xlu1 %v586_v58  ;;  %v1122_v58 = vld [vmem:[%s1909_s2 + $0x30] sm:$0xff] }
 0x2c3   : > { %v1507_v59 = vpop.eup %1506 }
 0x2c4   : > { %v589_v60 = vsel %vm296_vm1, %v1507_v59, 0.0 }
 0x2c5   : > { %590 = vadd.xlane.f32.xlu0 %v589_v60  ;;  %v1120_v60 = vld [vmem:[%s1909_s2 + $0x20] sm:$0xff] }
 0x2c7   : > { %v1509_v61 = vpop.eup %1508 }
 0x2c8   : > { %v791_v62 = vsel %vm296_vm1, %v1509_v61, 0.0 }
 0x2c9   : > { %792 = vadd.xlane.f32.xlu0 %v791_v62  ;;  %v1118_v62 = vld [vmem:[%s1909_s2 + $0x10] sm:$0xff] }
 0x2d2   : > { %889 = vrot.lane.b32.xlu1 %v1709_v11, %s1600_s10 }
 0x2df   : > { %891 = vrot.lane.b32.xlu0 %v1716_v13, %s1600_s10 }
 0x2e0   : > { %v778_v0 = vpop.xlane.xlu1 %777 }
 0x2e1   : > { %v782_v1 = vsub.f32 %v767_v35, %v778_v0  ;;  %v1116_v0 = vld [vmem:[%s1909_s2] sm:$0xff] }
 0x2e3   : > { %v784_v2 = vmul.f32 1.442695, %v782_v1  ;;  %885 = vrot.lane.b32.xlu0 %v1709_v11, %s1601_s11 }
 0x2e4   : > { %v799_v6 = vpop.permute.xlu1 %798 }
 0x2e5   : > { %1510 = vpow2.f32 %v784_v2 }
 0x2f2   : > { %v1511_v3 = vpop.eup %1510 }
 0x2f3   : > { %v788_v4 = vsel %vm296_vm1, %v1511_v3, 0.0 }
 0x2f6   : > { %789 = vadd.xlane.f32.xlu1 %v788_v4 }
 0x307   : > { %887 = vrot.lane.b32.xlu1 %v1716_v13, %s1601_s11 }
 0x344   : > { %v397_v7 = vpop.xlane.xlu0 %396 }
 0x345   : > { %1512 = vrcp.f32 %v397_v7 }
 0x346   : > { %v394_v8 = vpop.xlane.xlu1 %393 }
 0x347   : > { %1514 = vrcp.f32 %v394_v8 }
 0x34a   : > { %v588_v9 = vpop.xlane.xlu1 %587 }
 0x34b   : > { %1516 = vrcp.f32 %v588_v9 }
 0x34e   : > { %v591_v10 = vpop.xlane.xlu0 %590  ;;  %v890_v23 = vpop.permute.xlu1 %889 }
 0x34f   : > { %1518 = vrcp.f32 %v591_v10 }
 0x352   : > { %v1513_v14 = vpop.eup %1512  ;;  %v793_v20 = vpop.xlane.xlu0 %792 }
 0x353   : > { %v401_v16 = vmul.f32 %v1513_v14, %v1501_v53  ;;  %1520 = vrcp.f32 %v793_v20 }
 0x354   : > { %v1515_v11 = vpop.eup %1514 }
 0x355   : > { %v399_v15 = vmul.f32 %v1515_v11, %v1503_v55 }
 0x356   : > { %v892_v22 = vpop.permute.xlu0 %891 }
 0x357   : > { %1387 = vmatprep.mubr.msk.f32.mxu1 %vm296_vm1, %v399_v15 }
 0x358   : > { %v1517_v17 = vpop.eup %1516  ;;  %1388 = vmatmul.mubr.msk.f32.vlgmr.msra.gmra.mxu1 %vm296_vm1, %v401_v16 }
 0x359   : > { %1398 = vmatpush3.msra.mxu1 %v1773_v42  ;;  %v593_v13 = vmul.f32 %v1517_v17, %v1505_v57  ;;  %v1324_v17 = vld [vmem:[%s1910_s3] ss:$0 sm:$0xff] }
 0x35a   : > { %1399 = vmatprep.subr.mxu1 %v599_v5  ;;  %v886_v29 = vpop.permute.xlu0 %885 }
 0x35b   : > { %1400 = vmatpush3.msra.mxu1 %v599_v5  ;;  %1401 = vmatprep.mubr.msk.f32.mxu1 %vm296_vm1, %v593_v13 }
 0x35c   : > { %v1519_v19 = vpop.eup %1518  ;;  %1411 = vmatprep.subr.mxu1 %v801_v63 }
 0x35d   : > { %v595_v21 = vmul.f32 %v1519_v19, %v1507_v59  ;;  %v1121_v59 = vld [vmem:[%s1909_s2 + $0x28] sm:$0xff] }
 0x35f   : > { %1402 = vmatmul.mubr.msk.f32.vlgmr.msra.gmra.mxu1 %vm296_vm1, %v595_v21 }
 0x360   : > { %1412 = vmatpush3.msra.mxu1 %v801_v63  ;;  %v1521_v25 = vpop.eup %1520  ;;  %v1117_v63 = vld [vmem:[%s1909_s2 + $0x8] sm:$0xff] }
 0x361   : > { %1413 = vmatprep.subr.mxu1 %v799_v6  ;;  %v797_v28 = vmul.f32 %v1521_v25, %v1509_v61  ;;  %v1119_v61 = vld [vmem:[%s1909_s2 + $0x18] sm:$0xff] }
 0x362   : > { %1414 = vmatpush3.msra.mxu1 %v799_v6 }
 0x363   : > { %1418 = vmatprep.subr.msk.mxu1 %vm296_vm1, %v892_v22 }
 0x37f   : > { %v790_v24 = vpop.xlane.xlu1 %789 }
 0x380   : > { %1522 = vrcp.f32 %v790_v24 }
 0x383   : > { %v888_v30 = vpop.permute.xlu1 %887 }
 0x38d   : > { %v1523_v26 = vpop.eup %1522 }
 0x38e   : > { %v795_v27 = vmul.f32 %v1523_v26, %v1511_v3 }
 0x390   : > { %1415 = vmatprep.mubr.msk.f32.mxu1 %vm296_vm1, %v795_v27 }
 0x391   : > { %1416 = vmatmul.mubr.msk.f32.vlgmr.msra.gmra.mxu1 %vm296_vm1, %v797_v28 }
 0x392   : > { %1419 = vmatpush3.xpose.msk.msra.mxu1 %vm296_vm1, %v892_v22  ;;  %1422 = vmatprep.mubr.msk.f32.mxu1 %vm296_vm1, %v886_v29 }
 0x393   : > { %1420 = vmatprep.subr.msk.mxu1 %vm296_vm1, %v890_v23 }
 0x396   : > { %1421 = vmatpush3.xpose.msk.msra.mxu1 %vm296_vm1, %v890_v23 }
 0x399   : > { %1423 = vmatmul.mubr.msk.f32.vlgmr.msra.gmra.mxu1 %vm296_vm1, %v888_v30 }
 0x418   : > { %v1803_v31 = vpop.f32.mrf.mxu1 }
 0x41a   : > { %v1805_v32 = vpop.f32.mrf.mxu1 }
 0x41f   : > { %v1403_v33 = vpop.f32.mrf.mxu1 }
 0x421   : > { %v676_v34 = vpop.f32.mrf.mxu1 }
 0x451   : > { %v1417_v35 = vpop.f32.mrf.mxu1 }
 0x453   : > { %v876_v36 = vpop.f32.mrf.mxu1 }
 0x459   : > { %v1424_v37 = vpop.f32.mrf.mxu1 }
 0x45a   : > { %v979_v38 = vsel %vm296_vm1, %v1424_v37, -inf }
 0x45b   : > { %980 = vmax.xlane.f32.xlu1 %v979_v38  ;;  %v967_v39 = vpop.f32.mrf.mxu1 }
 0x45c   : > { %v976_v40 = vsel %vm296_vm1, %v967_v39, -inf }
 0x45d   : > { %977 = vmax.xlane.f32.xlu0 %v976_v40 }
 0x46c   : > { %1000 = vrot.lane.b32.xlu1 %v1739_v18, %s1601_s11 }
 0x470   : > { %1087 = vrot.lane.b32.xlu1 %v676_v34, %s1600_s10 }
 0x474   : > { %1089 = vrot.lane.b32.xlu1 %v1403_v33, %s1600_s10 }
 0x478   : > { %1097 = vrot.lane.b32.xlu1 %v1417_v35, %s1597_s7 }
 0x4e4   : > { %v981_v41 = vpop.xlane.xlu1 %980 }
 0x4e5   : > { %v983_v42 = vsub.f32 %v1424_v37, %v981_v41 }
 0x4e6   : > { %v978_v43 = vpop.xlane.xlu0 %977 }
 0x4e7   : > { %v986_v44 = vmul.f32 1.442695, %v983_v42  ;;  %v982_v45 = vsub.f32 %v967_v39, %v978_v43 }
 0x4e8   : > { %v1001_v46 = vpop.permute.xlu1 %1000 }
 0x4e9   : > { %1524 = vpow2.f32 %v986_v44  ;;  %v984_v47 = vmul.f32 1.442695, %v982_v45  ;;  %1425 = vmatprep.subr.mxu0 %v1001_v46 }
 0x4ea   : > { %1426 = vmatpush3.msra.mxu0 %v1001_v46 }
 0x4eb   : > { %1526 = vpow2.f32 %v984_v47 }
 0x4ec   : > { %v1088_v3 = vpop.permute.xlu1 %1087 }
 0x4ed   : > { %v1109_v7 = vsel %vm296_vm1, %v1805_v32, %v1088_v3 }
 0x4f0   : > { %v1090_v4 = vpop.permute.xlu1 %1089 }
 0x4f1   : > { %v1110_v9 = vsel %vm296_vm1, %v1803_v31, %v1090_v4 }
 0x4f4   : > { %v1098_v5 = vpop.permute.xlu1 %1097 }
 0x4f5   : > { %v1112_v11 = vsel %vm206_vm0, %v1110_v9, %v1098_v5 }
 0x4f6   : > { %v1525_v48 = vpop.eup %1524 }
 0x4f7   : > { %v991_v18 = vsel %vm296_vm1, %v1525_v48, 0.0 }
 0x4f8   : > { %v1527_v49 = vpop.eup %1526  ;;  %992 = vadd.xlane.f32.xlu0 %v991_v18 }
 0x4f9   : > { %v988_v50 = vsel %vm296_vm1, %v1527_v49, 0.0 }
 0x4fc   : > { %989 = vadd.xlane.f32.xlu0 %v988_v50 }
 0x512   : > { %998 = vrot.lane.b32.xlu0 %v1714_v12, %s1601_s11  ;;  %v1123_v12 = vld [vmem:[%s1909_s2 + $0x38] sm:$0xff] }
 0x516   : > { %1095 = vrot.lane.b32.xlu0 %v876_v36, %s1597_s7  ;;  %s1536_s7 = sshll.u32 %s1602_s5, 4  ;;  %s1537_s7 = int_to_ptr.vmem [resolvable:$false] %s1536_s7 }
 0x517   : > { %s1538_s8 = scalar_lea.vmem %s1537_s7, 512 }
 0x581   : > { %v993_v51 = vpop.xlane.xlu0 %992 }
 0x582   : > { %1528 = vrcp.f32 %v993_v51 }
 0x585   : > { %v990_v52 = vpop.xlane.xlu0 %989 }
 0x586   : > { %1530 = vrcp.f32 %v990_v52 }
 0x589   : > { %v999_v53 = vpop.permute.xlu0 %998 }
 0x58a   : > { %1427 = vmatprep.subr.mxu0 %v999_v53 }
 0x58b   : > { %1428 = vmatpush3.msra.mxu0 %v999_v53 }
 0x58c   : > { %1432 = vmatprep.subr.mxu0 %v1123_v12 }
 0x58d   : > { %v1096_v6 = vpop.permute.xlu0 %1095 }
 0x58e   : > { %v1111_v10 = vsel %vm206_vm0, %v1109_v7, %v1096_v6 }
 0x58f   : > { %v1529_v54 = vpop.eup %1528 }
 0x590   : > { %v997_v57 = vmul.f32 %v1529_v54, %v1525_v48 }
 0x593   : > { %v1531_v55 = vpop.eup %1530 }
 0x594   : > { %v995_v56 = vmul.f32 %v1531_v55, %v1527_v49 }
 0x596   : > { %1429 = vmatprep.mubr.msk.f32.mxu0 %vm296_vm1, %v995_v56 }
 0x597   : > { %1430 = vmatmul.mubr.msk.f32.vlgmr.msra.gmra.mxu0 %vm296_vm1, %v997_v57 }
 0x598   : > { %1433 = vmatpush3.msra.mxu0 %v1123_v12 }
 0x599   : > { %1434 = vmatprep.subr.mxu0 %v1122_v58 }
 0x59a   : > { %1435 = vmatpush3.msra.mxu0 %v1122_v58 }
 0x59b   : > { %1436 = vmatprep.subr.mxu0 %v1121_v59 }
 0x59c   : > { %1437 = vmatpush3.msra.mxu0 %v1121_v59 }
 0x59d   : > { %1438 = vmatprep.subr.mxu0 %v1120_v60 }
 0x59e   : > { %1439 = vmatpush3.msra.mxu0 %v1120_v60 }
 0x59f   : > { %1440 = vmatprep.subr.mxu0 %v1119_v61 }
 0x5a0   : > { %1441 = vmatpush3.msra.mxu0 %v1119_v61 }
 0x5a1   : > { %1442 = vmatprep.subr.mxu0 %v1118_v62 }
 0x5a2   : > { %1443 = vmatpush3.msra.mxu0 %v1118_v62 }
 0x5a3   : > { %1444 = vmatprep.subr.mxu0 %v1117_v63 }
 0x5a4   : > { %1445 = vmatpush3.msra.mxu0 %v1117_v63 }
 0x5a5   : > { %1446 = vmatprep.subr.mxu0 %v1116_v0 }
 0x5a6   : > { %1447 = vmatpush3.msra.mxu0 %v1116_v0 }
 0x657   : > { %v1431_v1 = vpop.f32.mrf.mxu0 }
 0x658   : > { %1105 = vrot.lane.b32.xlu1 %v1431_v1, %s1596_s6 }
 0x659   : > { %v1076_v2 = vpop.f32.mrf.mxu0 }
 0x65a   : > { %1103 = vrot.lane.b32.xlu0 %v1076_v2, %s1596_s6  ;;  %s188_s6 = sand.u32 1, %s1584_s16  }
 0x65b   : > { %s1295_s12 = sshll.u32 %s188_s6, 4  ;;  %s1867_s30 = scalar_lea.sflag [#allocation3], %s188_s6 }
 0x65c   : > { %s190_s20 = scalar_lea.vmem [#allocation2], %s1295_s12 }
 0x65d   : > { %s1229_s22 = sshll.u32 %s190_s20, 4  ;;  %s1858_s22 = int_to_ptr.vmem [resolvable:$true] %s1229_s22 }
 0x65e   : > { %s1532_s19 = scalar_lea.vmem %s1858_s22, 256  ;;  %p1539_p0 = scmp.lt.s32.totalorder %s1858_s22, %s1537_s7 }
 0x65f   : > { %p1533_p11 = scmp.ne.s32.totalorder %s1858_s22, %s1532_s19  ;;  %p1540_p1 = scmp.lt.s32.totalorder %s1538_s8, %s1532_s19 }
 0x661   : > { %p1534_p12 = pnand %p1533_p11, %p1668_p5  ;;  %p1541_p2 = por %p1540_p1, %p1539_p0 }
 0x663   : > { %p1535_p13 = pneg %p1534_p12 }
 0x665   : > { %p1542_p3 = pnand %p1541_p2, %p1535_p13 }
 0x6ca   : > { %v1106_v8 = vpop.permute.xlu1 %1105 }
 0x6cb   : > { %v1115_v16 = vsel %vm1113_vm2, %v1112_v11, %v1106_v8 }
 0x6cc   : > { %v1104_v14 = vpop.permute.xlu0 %1103 }
 0x6cd   : > { %v1114_v15 = vsel %vm1113_vm2, %v1111_v10, %v1104_v14 }
 0x6ce   : > { %1448 = vmatprep.mubr.msk.f32.mxu0 %vm1131_vm3, %v1114_v15 }
 0x6cf   : > { %1449 = vmatmul.mubr.msk.f32.vlgmr.msra.gmra.mxu0 %vm1131_vm3, %v1115_v16 }
 0x78f   : > { %v1450_v13 = vpop.f32.mrf.mxu0 }
 0x790   : > { %v1210_v19 = vadd.f32 %v1450_v13, %v1324_v17 }
 0x791   : > { %v1204_v20 = vpop.f32.mrf.mxu0 }
 0x792   : > { %1214 = vst.msk [vmem:[%s190_s20 + $0x8] sm:$0xff] %vm206_vm0, %v1210_v19  ;;  %v1205_v21 = vadd.f32 %v1324_v17, %v1204_v20 }
 0x794   : > { %1213 = vst.msk [vmem:[%s190_s20] sm:$0xff] %vm206_vm0, %v1205_v21 }
 0x795   : > { %1545 = shalt.err (!%p1542_p3)
}
 0x796   : > { %s1546_s9 = scalar_lea.hbm %s1863_s29, 256  ;;  %s1550_s6 = scalar_lea.hbm %s1911_s4, 512 }
 0x797   : > { %p1547_p4 = scmp.ne.s32.totalorder %s1863_s29, %s1546_s9  ;;  %p1551_p9 = scmp.lt.s32.totalorder %s1863_s29, %s1911_s4 }
 0x798   : > { %p1552_p10 = scmp.lt.s32.totalorder %s1550_s6, %s1546_s9 }
 0x799   : > { %p1548_p7 = pnand %p1547_p4, %p1668_p5 }
 0x79a   : > { %p1553_p11 = por %p1552_p10, %p1551_p9 }
 0x79b   : > { %p1549_p8 = pneg %p1548_p7 }
 0x79d   : > { %p1554_p12 = pnand %p1553_p11, %p1549_p8 }
 0x79f   : > { %1557 = shalt.err (!%p1554_p12)
}
 0x7a0   : > { %s1603_s14 = smov 128   ;;  %s1604_s20 = smov 8  }
 0x7a1   : > { %1451 = dma.vmem_to_hbm [thread:$0]  (%p1668_p5), %s1858_s22, 256, %s1863_s29, %s1867_s30, %s1603_s14, %s1603_s14, %s1604_s20  }
 0x7a2 PF: > { %p1457_p13 = scmp.ge.s32.totalorder %s1592_s18, 2  ;;  %s1244_s23 = sand.u32 1, %s1580_s15  }
 0x7a3   : > { %s1245_s27 = scalar_lea.sflag [#allocation3], %s1244_s23 }
 0x7a4   : > { %p1454_p0 = pnand %p1457_p13, %p1672_p6 }
 0x7a6   : > { %p1455_p1 = pneg %p1454_p0 }
 0x7a8   : > { %1575 = dma.done.wait (%p1455_p1), %s1245_s27, 256  }
 0x7a9   : > { %1577 = vsyncadd (%p1455_p1), %s1245_s27, 4294967040  ;;  %p14_p2 = scmp.ge.s32.totalorder %s1655_s21, 4   ;;  %s1914_s15 = smov %s1584_s16 }
 0x7aa   : > { %s1915_s16 = smov %s1588_s17  ;;  %s1916_s17 = smov %s1666_s24 }
 0x7ab   : > { %s1917_s18 = smov %s1655_s21  ;;  %16 = sbr.rel (!%p14_p2) target bundleno = 3 (0x3), region = 71 }
 0x7b0   :  { %1250 = vsyncpa [#allocation3], 1 }
 0x7b1   :  { %1252 = vsyncpa [#allocation3 + $0x1], 1 }

</bundles_post_ra>
